<compile_context>
chip_gen: v7x
topology: tpu7x:2x2x1
jax: 0.10.0
libtpu: 0.0.40
codegen_flags: <defaults>
</compile_context>

<pallas_src>
import jax
import jax.numpy as jnp
from jax.experimental import pallas as pl
from jax.experimental.pallas import tpu as pltpu

_SUBLANE = 8
_LANE = 128
_DMA_SLOTS = 8                                   # outstanding row DMAs in the gather path
_V5E_DEFAULT_SCOPED_VMEM = 16 * 1024 * 1024      # smallest default scoped VMEM limit


def _round_up(x, m):
    return (x + m - 1) // m * m


def _vmem_capacity_bytes():
    # Trace-time hardware query; fall back to the smallest current-gen per-core
    # VMEM (v7x: 64 MiB) if the query is unavailable.
    try:
        return int(pltpu.get_tpu_info().vmem_capacity_bytes)
    except Exception:
        return 64 * 1024 * 1024


# --------------------------------------------------------------------------- #
# Path A: VMEM-resident table, one-hot MXU gather (small / medium tables).
# --------------------------------------------------------------------------- #
def _one_hot_gather_kernel(labels_ref, table_ref, out_ref):
    # labels_ref: (b_tile, 1) int32 block of labels for this batch tile
    # table_ref : (vocab, hidden) full embedding table (constant index_map ->
    #             DMA'd from HBM once and reused across all batch tiles)
    # out_ref   : (b_tile, hidden) output block
    b_tile = out_ref.shape[0]
    vocab = table_ref.shape[0]
    labels = labels_ref[...]                                            # (b_tile, 1)
    classes = jax.lax.broadcasted_iota(jnp.int32, (b_tile, vocab), 1)   # lane iota
    one_hot = (labels == classes).astype(table_ref.dtype)               # exact 0/1
    # 0/1 weights make the row gather exact; HIGHEST requests the multi-pass
    # full-f32 MXU path. Dense (b_tile, hidden) result -> unmasked stores.
    out_ref[...] = jnp.dot(
        one_hot,
        table_ref[...],
        preferred_element_type=jnp.float32,
        precision=jax.lax.Precision.HIGHEST,
    ).astype(out_ref.dtype)


# --------------------------------------------------------------------------- #
# Path B: table stays in HBM; manual row-gather DMAs (tables too big for VMEM).
# --------------------------------------------------------------------------- #
def _dma_gather_kernel(labels_smem, table_hbm, out_ref, dma_sem):
    # labels_smem: (n_tiles * b_tile,) int32, scalar-prefetched into SMEM
    # table_hbm  : (vocab, hidden) embedding table left in HBM (pl.ANY)
    # out_ref    : (b_tile, hidden) VMEM output block (DMA destination)
    # dma_sem    : (_DMA_SLOTS,) DMA semaphores, round-robin slots
    b_tile = out_ref.shape[0]
    base = pl.program_id(0) * b_tile
    n_inflight = min(_DMA_SLOTS, b_tile)

    def issue(b, slot):
        lbl = labels_smem[base + b]
        pltpu.make_async_copy(
            table_hbm.at[pl.ds(lbl, 1), :],
            out_ref.at[pl.ds(b, 1), :],
            dma_sem.at[slot],
        ).start()

    def retire(slot):
        # Every row DMA moves an identical (1, hidden) block, so any matching
        # src/dst pair gives .wait() the right byte count for this slot.
        pltpu.make_async_copy(
            table_hbm.at[pl.ds(0, 1), :],
            out_ref.at[pl.ds(0, 1), :],
            dma_sem.at[slot],
        ).wait()

    # Prime: keep n_inflight row DMAs outstanding (statically unrolled).
    for b in range(n_inflight):
        issue(b, b)

    # Steady state: retire the oldest DMA in this slot, then reuse the slot.
    def step(b, carry):
        slot = b % n_inflight
        retire(slot)
        issue(b, slot)
        return carry

    jax.lax.fori_loop(n_inflight, b_tile, step, 0, unroll=8)

    # Drain the tail (statically unrolled).
    for slot in range(n_inflight):
        retire(slot)


# --------------------------------------------------------------------------- #
# Wrapper
# --------------------------------------------------------------------------- #
def pallas_label_embed(labels, embedding_table, *, batch_tile=256, force_dma_gather=False):
    """out[b, :] = embedding_table[labels[b], :] via a batch-tiled Pallas gather."""
    (batch,) = labels.shape
    vocab, hidden = embedding_table.shape
    itemsize = embedding_table.dtype.itemsize

    # Bound labels on BOTH sides: negative / too-large labels would otherwise hit
    # unchecked OOB reads (PyTorch would raise; we clamp deterministically instead).
    labels = jnp.clip(labels.astype(jnp.int32), 0, vocab - 1)

    b_tile = min(batch_tile, _round_up(batch, _SUBLANE))
    n_tiles = (batch + b_tile - 1) // b_tile
    grid = (n_tiles,)

    # Batch tiles are independent; only worth sharding across TensorCores (v7x
    # megacore) when there are >= 2 tiles (otherwise it just duplicates table DMA).
    dim_sem = ("parallel",) if n_tiles >= 2 else ("arbitrary",)

    # ---- VMEM budgeting for the resident-table path -------------------------
    table_bytes = vocab * hidden * itemsize
    out_block_bytes = b_tile * hidden * itemsize
    onehot_bytes = b_tile * max(vocab, _LANE) * 4
    # Conservative: count the table twice (the constant-index_map block may still be
    # allocated double-buffered), plus double-buffered labels/output blocks + slack.
    resident_bytes = (2 * table_bytes + 2 * out_block_bytes + 2 * b_tile * 4
                      + onehot_bytes + (2 << 20))
    vmem_budget = int(0.75 * _vmem_capacity_bytes())
    use_resident = (resident_bytes <= vmem_budget) and not force_dma_gather

    if use_resident:
        cp = dict(dimension_semantics=dim_sem)
        # Default scoped VMEM limit is 16 MiB on v5e (32 MiB on v6e/v7x); raise it
        # only when our conservative footprint exceeds the smallest default.
        if resident_bytes > _V5E_DEFAULT_SCOPED_VMEM:
            cp["vmem_limit_bytes"] = int(resident_bytes)
        return pl.pallas_call(
            _one_hot_gather_kernel,
            grid=grid,
            in_specs=[
                pl.BlockSpec((b_tile, 1), lambda i: (i, 0)),       # labels tile
                pl.BlockSpec((vocab, hidden), lambda i: (0, 0)),   # resident table
            ],
            out_specs=pl.BlockSpec((b_tile, hidden), lambda i: (i, 0)),
            out_shape=jax.ShapeDtypeStruct((batch, hidden), embedding_table.dtype),
            compiler_params=pltpu.CompilerParams(**cp),
            cost_estimate=pl.CostEstimate(
                flops=2 * n_tiles * b_tile * vocab * hidden,
                transcendentals=0,
                bytes_accessed=table_bytes + batch * hidden * itemsize + batch * 4,
            ),
        )(labels.reshape(batch, 1), embedding_table)

    # ---- HBM row-gather path (table too large to keep VMEM-resident) --------
    padded = n_tiles * b_tile
    if padded != batch:
        # Pad labels so SMEM reads stay in bounds; padded rows gather row 0 into the
        # tail of the last block, which Pallas masks out on writeback.
        labels = jnp.pad(labels, (0, padded - batch))
    return pl.pallas_call(
        _dma_gather_kernel,
        grid_spec=pltpu.PrefetchScalarGridSpec(
            num_scalar_prefetch=1,                         # labels -> SMEM
            grid=grid,
            in_specs=[pl.BlockSpec(memory_space=pl.ANY)],  # table stays in HBM
            out_specs=pl.BlockSpec((b_tile, hidden), lambda i, labels_smem: (i, 0)),
            scratch_shapes=[pltpu.SemaphoreType.DMA((_DMA_SLOTS,))],
        ),
        out_shape=jax.ShapeDtypeStruct((batch, hidden), embedding_table.dtype),
        compiler_params=pltpu.CompilerParams(dimension_semantics=dim_sem),
        cost_estimate=pl.CostEstimate(
            flops=0,
            transcendentals=0,
            bytes_accessed=2 * batch * hidden * itemsize + padded * 4,
        ),
    )(labels, embedding_table)


class LabelEmbedderPallas:
    """JAX/Pallas port of the PyTorch LabelEmbedder (forward pass)."""

    def __init__(self, num_classes, hidden_size, dropout_prob, *, param_key):
        use_cfg_embedding = int(dropout_prob > 0)
        # nn.Embedding default init: N(0, 1)
        self.embedding_table = jax.random.normal(
            param_key, (num_classes + use_cfg_embedding, hidden_size), dtype=jnp.float32
        )
        self.num_classes = num_classes
        self.dropout_prob = dropout_prob

    def token_drop(self, labels, drop_key=None, force_drop_ids=None):
        # TODO(synk): the stochastic drop mask uses jax.random outside the kernel
        # (torch.rand has no in-kernel equivalent worth fusing for a (B,) vector).
        if force_drop_ids is None:
            drop_ids = jax.random.uniform(drop_key, (labels.shape[0],)) < self.dropout_prob
        else:
            drop_ids = force_drop_ids == 1
        return jnp.where(drop_ids, self.num_classes, labels).astype(jnp.int32)

    def __call__(self, labels, train, drop_key=None, force_drop_ids=None):
        use_dropout = self.dropout_prob > 0
        if (train and use_dropout) or (force_drop_ids is not None):
            labels = self.token_drop(labels, drop_key, force_drop_ids)
        return pallas_label_embed(labels.astype(jnp.int32), self.embedding_table)


if __name__ == "__main__":
    num_classes = 10
    hidden_size = 128
    dropout_prob = 0.1
    batch = 12  # not a multiple of 8 -> exercises the partial last tile / masked writeback

    root = jax.random.PRNGKey(0)
    k_param, k_labels, k_drop = jax.random.split(root, 3)

    module = LabelEmbedderPallas(num_classes, hidden_size, dropout_prob, param_key=k_param)
    labels = jax.random.randint(k_labels, (batch,), 0, num_classes, dtype=jnp.int32)

    # The one-hot matmul requests the exact multi-pass f32 MXU path (HIGHEST); the
    # loose atol additionally tolerates a worst-case single-pass bf16 MXU on older
    # lowerings while still distinguishing table rows (rows differ O(1) per element).
    tol = dict(rtol=0.0, atol=2e-2)

    # 1) eval mode (no drop): pure gather.
    out_eval = jax.block_until_ready(module(labels, train=False))
    ref_eval = module.embedding_table[labels]
    assert out_eval.shape == (batch, hidden_size)
    assert jnp.allclose(out_eval, ref_eval, **tol), "eval-mode gather mismatch"

    # 2) train mode with stochastic CFG label drop (same key -> same drop decisions).
    out_train = jax.block_until_ready(module(labels, train=True, drop_key=k_drop))
    ref_train = module.embedding_table[module.token_drop(labels, drop_key=k_drop)]
    assert jnp.allclose(out_train, ref_train, **tol), "train-mode gather mismatch"

    # 3) force_drop_ids path.
    force_ids = jnp.array([1, 0, 1, 0, 0, 0, 1, 0, 1, 0, 0, 1], dtype=jnp.int32)
    out_force = jax.block_until_ready(module(labels, train=False, force_drop_ids=force_ids))
    ref_force = module.embedding_table[jnp.where(force_ids == 1, num_classes, labels)]
    assert jnp.allclose(out_force, ref_force, **tol), "force_drop_ids gather mismatch"

    # 4) HBM row-gather path (auto-selected for tables too big for VMEM); force it
    #    here so it stays tested. Pure DMA row copies -> bit exact.
    out_dma = jax.block_until_ready(
        pallas_label_embed(labels, module.embedding_table, force_dma_gather=True))
    assert jnp.array_equal(out_dma, ref_eval), "DMA-gather path mismatch"

    print("KERNEL_OK")
</pallas_src>

<mosaic_0001>
module attributes {stable_mosaic.version = 11 : i64} {
  func.func @_one_hot_gather_kernel(%arg0: i32, %arg1: memref<16x1xi32, #tpu.memory_space<vmem>>, %arg2: memref<11x128xf32, #tpu.memory_space<vmem>>, %arg3: memref<16x128xf32, #tpu.memory_space<vmem>>) attributes {dimension_semantics = [#tpu.dimension_semantics<arbitrary>], iteration_bounds = array<i64: 1>, scalar_prefetch = 0 : i64, scratch_operands = 0 : i64, tpu.core_type = #tpu.core_type<tc>, window_params = [{transform_indices = @transform_0, window_bounds = array<i64: 16, 1>}, {pipeline_mode = #tpu.pipeline_mode<synchronous>, transform_indices = @transform_1, window_bounds = array<i64: 11, 128>}, {transform_indices = @transform_2, window_bounds = array<i64: 16, 128>}]} {
    %c0 = arith.constant 0 : index
    %c0_0 = arith.constant 0 : index
    %0 = vector.load %arg1[%c0, %c0_0] : memref<16x1xi32, #tpu.memory_space<vmem>>, vector<16x1xi32>
    %1 = tpu.iota {dimensions = array<i32: 1>} : vector<16x11xi32>
    %2 = vector.broadcast %0 : vector<16x1xi32> to vector<16x11xi32>
    %3 = arith.cmpi eq, %2, %1 : vector<16x11xi32>
    %4 = arith.extui %3 : vector<16x11xi1> to vector<16x11xi32>
    %5 = arith.sitofp %4 : vector<16x11xi32> to vector<16x11xf32>
    %c0_1 = arith.constant 0 : index
    %c0_2 = arith.constant 0 : index
    %6 = vector.load %arg2[%c0_1, %c0_2] : memref<11x128xf32, #tpu.memory_space<vmem>>, vector<11x128xf32>
    %cst = arith.constant dense<0.000000e+00> : vector<16x128xf32>
    %7 = tpu.matmul %5, %6, %cst {dimension_numbers = #tpu.dot_dimension_numbers<[1], [0], [0], [1], [0, 0, 1, 1], [], []>, precision = #tpu.contract_precision<fp32>} : vector<16x11xf32>, vector<11x128xf32>, vector<16x128xf32> -> vector<16x128xf32>
    %c0_3 = arith.constant 0 : index
    %c0_4 = arith.constant 0 : index
    %8 = vector.load %arg3[%c0_3, %c0_4] : memref<16x128xf32, #tpu.memory_space<vmem>>, vector<16x128xf32>
    tpu.vector_store %arg3[%c0_3, %c0_4], %7 {strides = array<i32>} : memref<16x128xf32, #tpu.memory_space<vmem>>, vector<16x128xf32>,
    return
  }
  func.func @transform_0(%arg0: i32) -> (i32, i32) {
    %c0_i32 = arith.constant 0 : i32
    %c0_i32_0 = arith.constant 0 : i32
    return %arg0, %c0_i32 : i32, i32
  }
  func.func @transform_1(%arg0: i32) -> (i32, i32) {
    %c0_i32 = arith.constant 0 : i32
    %c0_i32_0 = arith.constant 0 : i32
    %c0_i32_1 = arith.constant 0 : i32
    return %c0_i32, %c0_i32_0 : i32, i32
  }
  func.func @transform_2(%arg0: i32) -> (i32, i32) {
    %c0_i32 = arith.constant 0 : i32
    %c0_i32_0 = arith.constant 0 : i32
    return %arg0, %c0_i32 : i32, i32
  }
}

</mosaic_0001>

<bundles_post_ra>
// kernel: tpu_custom_call.1
= control target key start
LH: loop header
LB: loop body
LE: loop exit
PB: predicated region body
PF: predicated region fallthrough
CT: control target
= control target key end

     0   :  { %v699_v1 = vmov 0   ;;  %s751_s0 = inlined_call_operand.vmem [shape: s32[12,1], index: 0, kind: input, shape index: {}]   ;;  %s752_s1 = inlined_call_operand.vmem [shape: f32[11,128], index: 1, kind: input, shape index: {}]   ;;  %s753_s2 = inlined_call_operand.hbm [shape: f32[12,128], index: 2, kind: output, shape index: {}]  }
   0x1   :  { %v12_v0 = vld [vmem:[%s751_s0] sm:$0xff]  ;;  %674 = vset.pattern.permute.xlu0 %v699_v1 }
   0x2   :  { %7 = vsyncpa [#allocation3], 0  ;;  %17 = vperm.xlu0 %674, %v12_v0   ;;  %v13_v2 = vld [vmem:[%s751_s0 + $0x8] sm:$0xff]  ;;  %vm37_vm0 = vcmask 1042432   ;;  %v28_v4 = vld [vmem:[%s752_s1] sm:$0xff]  ;;  %v14_v20 = vlaneseq  ;;  %vm30_vm1 = vcmask 89088  }
   0x3   :  { %v29_v3 = vld [vmem:[%s752_s1 + $0x8] sm:$0x7]  ;;  %v42_v6 = vand.u32 4294901760, %v28_v4  ;;  %v700_v23 = vmov 0.0   ;;  %s701_s0 = smov [#allocation2]  }
   0x4   :  { %v39_v5 = vsel %vm37_vm0, %v29_v3, 0  ;;  %v15_v21 = vand.u32 127, %v14_v20  ;;  %s550_s1 = sshll.u32 %s701_s0, 4  ;;  %s551_s1 = int_to_ptr.vmem [resolvable:$true] %s550_s1 }
   0x5   :  { %v45_v7 = vand.u32 4294901760, %v39_v5  ;;  %v130_v9 = vsub.f32 %v28_v4, %v42_v6  ;;  %s675_s17 = scalar_lea.vmem %s551_s1, 256  ;;  %p680_p1 = scmp.lt.s32.totalorder %s551_s1, %s551_s1 }
   0x6   :  { %20 = vperm.xlu0 %674, %v13_v2   ;;  %p676_p0 = scmp.ne.s32.totalorder %s551_s1, %s675_s17  ;;  %p681_p2 = scmp.lt.s32.totalorder %s675_s17, %s675_s17 }
   0x7   :  { %v635_v8 = vpack.c.bf16 %v45_v7, %v42_v6  ;;  %v137_v10 = vsub.f32 %v39_v5, %v45_v7  ;;  %v131_v11 = vand.u32 4294901760, %v130_v9 }
   0x8   :  { %p682_p3 = por %p681_p2, %p680_p1 }
   0x9   :  { %648 = vmatprep.subr.bf16.mxu0 %v635_v8  ;;  %636 = vmatprep.subr.bf16.mxu1 %v635_v8  ;;  %v138_v12 = vand.u32 4294901760, %v137_v10  ;;  %v132_v13 = vsub.f32 %v130_v9, %v131_v11  ;;  %v643_v19 = vpack.c.bf16 %v137_v10, %v130_v9 }
   0xa   :  { %650 = vmatpush3.bf16.msra.mxu0 %v635_v8  ;;  %638 = vmatpush3.bf16.msra.mxu1 %v635_v8  ;;  %p683_p4 = pnand %p682_p3, %p676_p0 }
   0xb   :  { %v139_v14 = vsub.f32 %v137_v10, %v138_v12  ;;  %v651_v15 = vpack.c.bf16 %v138_v12, %v131_v11  ;;  %v133_v16 = vand.u32 4294901760, %v132_v13 }
   0xd   :  { %v140_v17 = vand.u32 4294901760, %v139_v14  ;;  %652 = vmatprep.subr.bf16.mxu0 %v651_v15 }
   0xf   :  { %v639_v18 = vpack.c.bf16 %v140_v17, %v133_v16 }
  0x11   :  { %640 = vmatprep.subr.bf16.mxu1 %v639_v18 }
  0x81   :  { %v18_v22 = vpop.permute.xlu0 %17 }
  0x82   :  { %vm22_vm2 = vcmp.eq.s32.totalorder %v18_v22, %v15_v21 }
  0x83   :  { %v561_v24 = vsel %vm22_vm2, 1.0, %v700_v23 }
  0x84   :  { %v32_v25 = vsel %vm30_vm1, %v561_v24, 0 }
  0x85   :  { %v109_v26 = vsub.f32 %v32_v25, %v32_v25  ;;  %v21_v27 = vpop.permute.xlu0 %20 }
  0x86   :  { %vm23_vm3 = vcmp.eq.s32.totalorder %v21_v27, %v15_v21 }
  0x87   :  { %v562_v28 = vsel %vm23_vm3, 1.0, %v700_v23  ;;  %v110_v29 = vand.u32 4294901760, %v109_v26 }
  0x88   :  { %v35_v30 = vsel %vm30_vm1, %v562_v28, 0 }
  0x89   :  { %v119_v31 = vsub.f32 %v35_v30, %v35_v30  ;;  %618 = vmatprep.mubr.f32.mxu0 %v110_v29  ;;  %v111_v32 = vsub.f32 %v109_v26, %v110_v29 }
  0x8b   :  { %v112_v33 = vand.u32 4294901760, %v111_v32  ;;  %v120_v34 = vand.u32 4294901760, %v119_v31 }
  0x8d   :  { %597 = vmatprep.mubr.f32.mxu1 %v112_v33  ;;  %619 = vmatmul.mubr.f32.vlgmr.msra.gmra.mrb[0].mxu0 %v120_v34  ;;  %v121_v35 = vsub.f32 %v119_v31, %v120_v34 }
  0x8e   :  { %625 = vmatprep.mubr.msk.f32.mxu0 %vm30_vm1, %v561_v24  ;;  %654 = vmatpush3.bf16.msra.mxu0 %v651_v15 }
  0x8f   :  { %v122_v36 = vand.u32 4294901760, %v121_v35  ;;  %656 = vmatprep.subr.bf16.mxu0 %v635_v8 }
  0x91   :  { %598 = vmatmul.mubr.f32.vlgmr.msra.gmra.mrb[0].mxu1 %v122_v36 }
  0x92   :  { %642 = vmatpush3.bf16.msra.mxu1 %v639_v18  ;;  %604 = vmatprep.mubr.msk.f32.mxu1 %vm30_vm1, %v561_v24 }
  0x93   :  { %644 = vmatprep.subr.bf16.mxu1 %v643_v19 }
  0x95   :  { %626 = vmatmul.mubr.msk.f32.vlgmr.msra.gmra.mrb[0].mxu0 %vm30_vm1, %v562_v28 }
  0x96   :  { %632 = vmatprep.mubr.msk.f32.mxu0 %vm30_vm1, %v561_v24  ;;  %658 = vmatpush3.bf16.msra.mxu0 %v635_v8 }
  0x99   :  { %605 = vmatmul.mubr.msk.f32.vlgmr.msra.gmra.mrb[0].mxu1 %vm30_vm1, %v562_v28 }
  0x9a   :  { %646 = vmatpush3.bf16.msra.mxu1 %v643_v19  ;;  %611 = vmatprep.mubr.f32.mxu1 %v109_v26 }
  0x9d   :  { %633 = vmatmul.mubr.msk.f32.vlgmr.msra.gmra.mrb[0].mxu0 %vm30_vm1, %v562_v28 }
  0xa1   :  { %612 = vmatmul.mubr.f32.vlgmr.msra.gmra.mrb[0].mxu1 %v119_v31 }
 0x170   :  { %v634_v37 = vpop.f32.mrb[0].mxu0 }
 0x171   :  { %v533_v38 = vpop.f32.mrb[1].mxu0 }
 0x174   :  { %v613_v39 = vpop.f32.mrb[0].mxu1 }
 0x175   :  { %v659_v40 = vadd.f32 %v634_v37, %v613_v39  ;;  %v287_v41 = vpop.f32.mrb[1].mxu1 }
 0x176   :  { %v660_v42 = vadd.f32 %v533_v38, %v287_v41 }
 0x177   :  { %544 = vst [vmem:[#allocation2 + $0x8] sm:$0xff] %v659_v40 }
 0x178   :  { %543 = vst [vmem:[#allocation2] sm:$0xff] %v660_v42 }
 0x179   :  { %686 = shalt.err (!%p683_p4)
}
 0x17a   :  { %s687_s20 = scalar_lea.hbm %s753_s2, 256 }
 0x17b   :  { %p688_p5 = scmp.ne.s32.totalorder %s753_s2, %s687_s20  ;;  %p691_p6 = scmp.lt.u32.totalorder %s687_s20, %s753_s2 }
 0x17d   :  { %p693_p7 = pnand %p691_p6, %p688_p5 }
 0x17f   :  { %696 = shalt.err (!%p693_p7)
}
 0x180   :  { %s702_s25 = smov 128   ;;  %s703_s26 = smov 8  }
 0x181   :  { %556 = dma.vmem_to_hbm [thread:$0]  %s551_s1, 256, %s753_s2, [#allocation3], %s702_s25, %s702_s25, %s703_s26  }
 0x182   :  { %697 = dma.done.wait [#allocation3], 256  }
 0x183   :  { %698 = vsyncadd [#allocation3], 4294967040 }
 0x184   :  { %560 = vsyncpa [#allocation3], 1 }

</bundles_post_ra>
